<compile_context>
chip_gen: v6e
topology: v6e:2x2x1
jax: 0.10.0
libtpu: 0.0.40
codegen_flags: <defaults>
</compile_context>

<pallas_src>
import functools

import jax
import jax.numpy as jnp
from jax.experimental import pallas as pl
from jax.experimental.pallas import tpu as pltpu


def _cdiv(a, b):
    return -(-a // b)


def _vmem_capacity_bytes():
    """Physical VMEM per core; conservative 64 MiB fallback (fits every generation)."""
    try:
        info = pltpu.get_tpu_info()
        cap = getattr(info, "vmem_capacity_bytes", None)
        if isinstance(cap, int) and cap > 0:
            return cap
    except Exception:
        pass
    return 64 << 20


def _num_tensorcores():
    """TensorCores addressed by one kernel launch (2 on v7x-style megacore chips)."""
    try:
        info = pltpu.get_tpu_info()
        for name in ("num_cores", "num_tensorcores", "tensorcore_count", "cores_per_chip"):
            v = getattr(info, name, None)
            if isinstance(v, int) and v > 0:
                return v
    except Exception:
        pass
    try:
        d = jax.devices()[0]
        for name in ("num_cores", "core_count"):
            v = getattr(d, name, None)
            if isinstance(v, int) and v > 0:
                return v
    except Exception:
        pass
    return 1


# ----------------------------- Path A: fused single pass -----------------------------


def _se_fused_kernel(x_ref, w1t_ref, w2t_ref, o_ref, *, hw, mm_dtype):
    """Single pass over a resident (bt, C, HW) block: squeeze -> excite -> scale."""
    # Squeeze: chunked f32 accumulation; only the (bt, C) f32 accumulator stays live
    # (never a full f32 copy of the tile).
    chunk = min(hw, 2048)
    acc = jnp.zeros(x_ref.shape[:2], jnp.float32)
    for start in range(0, hw, chunk):
        size = min(chunk, hw - start)
        acc = acc + jnp.sum(
            x_ref[:, :, start:start + size].astype(jnp.float32), axis=2)
    y = acc * (1.0 / hw)                                                   # (bt, C)

    # Excitation: tiny row-vector matmuls, f32 accumulation on the MXU.
    h = jnp.maximum(
        jnp.dot(y.astype(mm_dtype), w1t_ref[...].astype(mm_dtype),
                preferred_element_type=jnp.float32), 0.0)                  # (bt, Ch)
    s = jax.nn.sigmoid(
        jnp.dot(h.astype(mm_dtype), w2t_ref[...].astype(mm_dtype),
                preferred_element_type=jnp.float32))                       # (bt, C)

    # Scale: multiply with the full-precision f32 gate, cast once at the store.
    o_ref[...] = (x_ref[...] * s[:, :, None]).astype(o_ref.dtype)


# -------------------- Path B: two-pass fallback (spatially tiled) --------------------


def _se_squeeze_kernel(x_ref, w1t_ref, w2t_ref, gate_ref, acc_ref,
                       *, hw, t_hw, mm_dtype, mask_tail):
    """Pass 1: accumulate f32 partial sums over HW tiles; finalize the (1, C, 1) gate."""
    j = pl.program_id(1)

    @pl.when(j == 0)
    def _init():
        acc_ref[...] = jnp.zeros_like(acc_ref)

    xb = x_ref[...].astype(jnp.float32)                      # (1, C, t_hw)
    if mask_tail:
        # Padded lanes of the last HW tile contain garbage -> zero them out.
        lane = jax.lax.broadcasted_iota(jnp.int32, xb.shape, 2)
        valid = hw - j * t_hw                                  # >= t_hw on non-tail tiles
        xb = jnp.where(lane < valid, xb, 0.0)
    acc_ref[...] += jnp.sum(xb, axis=2)

    @pl.when(j == pl.num_programs(1) - 1)
    def _finalize():
        y = acc_ref[...] * (1.0 / hw)                                         # (1, C)
        h = jnp.maximum(
            jnp.dot(y.astype(mm_dtype), w1t_ref[...].astype(mm_dtype),
                    preferred_element_type=jnp.float32), 0.0)
        s = jax.nn.sigmoid(
            jnp.dot(h.astype(mm_dtype), w2t_ref[...].astype(mm_dtype),
                    preferred_element_type=jnp.float32))
        gate_ref[...] = s[:, :, None]                                         # (1, C, 1)


def _se_scale_kernel(x_ref, gate_ref, o_ref):
    """Pass 2: out = x * gate; f32 multiply (dtype promotion), single cast at the store."""
    o_ref[...] = (x_ref[...] * gate_ref[...]).astype(o_ref.dtype)


# --------------------------------------- API ----------------------------------------


def se_layer(x, w1, w2, *, force_two_pass=False, hw_tile=None):
    """SE layer forward.

    x:  (B, C, H, W)
    w1: (C//r, C)   first bias-free Linear, PyTorch (out, in) layout
    w2: (C, C//r)   second bias-free Linear
    """
    B, C, H, W = x.shape
    HW = H * W
    Ch = w1.shape[0]
    itemsize = jnp.dtype(x.dtype).itemsize

    # Native layout: reshape only (free metadata op); no HBM transpose.
    x_flat = x.reshape(B, C, HW)
    w1t = w1.T                       # (C, Ch)
    w2t = w2.T                       # (Ch, C)
    # bf16 matmul inputs only when the caller already runs bf16 I/O (e.g. on v7x).
    mm_dtype = jnp.bfloat16 if x.dtype == jnp.bfloat16 else jnp.float32

    # Generation-aware VMEM sizing (128 MiB on v5e/v6e, 64 MiB on v7x).
    vmem_cap = _vmem_capacity_bytes()
    vmem_limit = max(32 << 20, min(int(vmem_cap * 0.8), vmem_cap - (8 << 20)))
    block_budget = int(vmem_limit * 0.8)     # double-buffered input + output blocks
    num_cores = _num_tensorcores()

    per_image_bytes = C * HW * itemsize
    use_two_pass = bool(force_two_pass) or (4 * per_image_bytes > block_budget)

    bt = 1
    nb = B
    if not use_two_pass:
        # Batch tile: as big as the budget allows, then shrunk toward ~4 grid steps
        # per TensorCore as long as blocks stay multi-MiB (pipelining needs steps,
        # DMA efficiency needs size). No forced 2-step clamp.
        bt = min(max(1, block_budget // (4 * per_image_bytes)), B)
        if bt > 1:
            target_steps = 4 * num_cores
            bt_steps = max(1, _cdiv(B, target_steps))
            bt_floor = min(B, max(1, _cdiv(4 << 20, per_image_bytes)))
            bt = min(bt, max(bt_steps, bt_floor))
        nb = _cdiv(B, bt)
        # On multi-TC chips a 1-step grid leaves cores idle; for big-enough data the
        # spatially tiled two-pass path exposes a parallel HW axis instead.
        if (num_cores >= 2 and nb < num_cores
                and B * per_image_bytes >= (8 << 20) and HW >= 256):
            use_two_pass = True

    if not use_two_pass:
        block = (bt, C, HW)
        # A padded tail batch block (B % bt != 0) is safe: every row of the
        # squeeze/excite/scale depends only on its own batch row and padded output
        # rows are discarded on writeback.
        cost = pl.CostEstimate(
            flops=2 * B * C * HW + 4 * B * C * Ch,
            transcendentals=B * C,
            bytes_accessed=(2 * B * C * HW * itemsize
                            + 2 * C * Ch * jnp.dtype(w1.dtype).itemsize),
        )
        out_flat = pl.pallas_call(
            functools.partial(_se_fused_kernel, hw=HW, mm_dtype=mm_dtype),
            out_shape=jax.ShapeDtypeStruct((B, C, HW), x.dtype),
            grid_spec=pltpu.PrefetchScalarGridSpec(
                num_scalar_prefetch=0,
                grid=(nb,),
                in_specs=[
                    pl.BlockSpec(block, lambda b: (b, 0, 0)),
                    pl.BlockSpec((C, Ch), lambda b: (0, 0)),   # w1.T
                    pl.BlockSpec((Ch, C), lambda b: (0, 0)),   # w2.T
                ],
                out_specs=pl.BlockSpec(block, lambda b: (b, 0, 0)),
            ),
            compiler_params=pltpu.CompilerParams(
                dimension_semantics=("parallel",),
                vmem_limit_bytes=vmem_limit,
            ),
            cost_estimate=cost,
        )(x_flat, w1t, w2t)
        return out_flat.reshape(B, C, H, W)

    # ------------- Two-pass fallback: tiled squeeze+excite, then parallel scale -------------
    if hw_tile is not None:
        t_hw = min(int(hw_tile), HW)
    else:
        t_hw = block_budget // (4 * C * itemsize)
    if t_hw < HW:
        t_hw = max(128, (t_hw // 128) * 128)      # lane-aligned tiles (multiple of 128)
    t_hw = min(t_hw, HW)
    n_hw = _cdiv(HW, t_hw)
    mask_tail = (HW % t_hw) != 0

    gate = pl.pallas_call(
        functools.partial(_se_squeeze_kernel, hw=HW, t_hw=t_hw,
                          mm_dtype=mm_dtype, mask_tail=mask_tail),
        out_shape=jax.ShapeDtypeStruct((B, C, 1), jnp.float32),
        grid_spec=pltpu.PrefetchScalarGridSpec(
            num_scalar_prefetch=0,
            grid=(B, n_hw),
            in_specs=[
                pl.BlockSpec((1, C, t_hw), lambda b, j: (b, 0, j)),
                pl.BlockSpec((C, Ch), lambda b, j: (0, 0)),     # w1.T
                pl.BlockSpec((Ch, C), lambda b, j: (0, 0)),     # w2.T
            ],
            out_specs=pl.BlockSpec((1, C, 1), lambda b, j: (b, 0, 0)),
            scratch_shapes=[pltpu.VMEM((1, C), jnp.float32)],
        ),
        compiler_params=pltpu.CompilerParams(
            dimension_semantics=("parallel", "arbitrary"),
            vmem_limit_bytes=vmem_limit,
        ),
    )(x_flat, w1t, w2t)

    out_flat = pl.pallas_call(
        _se_scale_kernel,
        out_shape=jax.ShapeDtypeStruct((B, C, HW), x.dtype),
        grid_spec=pltpu.PrefetchScalarGridSpec(
            num_scalar_prefetch=0,
            grid=(B, n_hw),
            in_specs=[
                pl.BlockSpec((1, C, t_hw), lambda b, j: (b, 0, j)),
                pl.BlockSpec((1, C, 1), lambda b, j: (b, 0, 0)),
            ],
            out_specs=pl.BlockSpec((1, C, t_hw), lambda b, j: (b, 0, j)),
        ),
        compiler_params=pltpu.CompilerParams(
            dimension_semantics=("parallel", "parallel"),
            vmem_limit_bytes=vmem_limit,
        ),
    )(x_flat, gate)
    return out_flat.reshape(B, C, H, W)


def _reference(x, w1, w2):
    # Pure-JAX reference mirroring the PyTorch forward.
    y = jnp.mean(x, axis=(2, 3))                    # (B, C)
    h = jnp.maximum(y @ w1.T, 0.0)                  # (B, C//r)
    s = jax.nn.sigmoid(h @ w2.T)                    # (B, C)
    return x * s[:, :, None, None]


if __name__ == "__main__":
    key = jax.random.PRNGKey(0)
    kx, k1, k2, kx2 = jax.random.split(key, 4)

    # Small shapes consistent with the module (channels divisible by reduction).
    B, C, H, W = 2, 64, 16, 16
    reduction = 16
    Ch = C // reduction

    x = jax.random.normal(kx, (B, C, H, W), dtype=jnp.float32)
    # Deterministic synthetic weights (bias-free Linears, PyTorch (out, in) layout).
    w1 = jax.random.normal(k1, (Ch, C), dtype=jnp.float32) * 0.1   # fc1: C -> C//r
    w2 = jax.random.normal(k2, (C, Ch), dtype=jnp.float32) * 0.1   # fc2: C//r -> C

    # Path A: fused single-pass kernel.
    out = jax.block_until_ready(se_layer(x, w1, w2))
    ref = _reference(x, w1, w2)
    assert out.shape == (B, C, H, W)
    assert jnp.allclose(out, ref, atol=1e-5, rtol=1e-5), "Path A mismatch vs reference"

    # Path B (forced): spatially tiled two-pass fallback, non-divisible HW tail
    # (exercises the partial-sum accumulator and the tail-lane masking).
    x2 = jax.random.normal(kx2, (2, 64, 18, 18), dtype=jnp.float32)
    out2 = jax.block_until_ready(se_layer(x2, w1, w2, force_two_pass=True, hw_tile=128))
    ref2 = _reference(x2, w1, w2)
    assert out2.shape == x2.shape
    assert jnp.allclose(out2, ref2, atol=1e-5, rtol=1e-5), "Path B mismatch vs reference"

    print("KERNEL_OK")
</pallas_src>

<mosaic_0001>
module attributes {stable_mosaic.version = 11 : i64} {
  func.func @_se_fused_kernel(%arg0: i32, %arg1: memref<2x64x256xf32, #tpu.memory_space<vmem>>, %arg2: memref<64x4xf32, #tpu.memory_space<vmem>>, %arg3: memref<4x64xf32, #tpu.memory_space<vmem>>, %arg4: memref<2x64x256xf32, #tpu.memory_space<vmem>>) attributes {dimension_semantics = [#tpu.dimension_semantics<parallel>], iteration_bounds = array<i64: 1>, scalar_prefetch = 0 : i64, scratch_operands = 0 : i64, tpu.core_type = #tpu.core_type<tc>, window_params = [{transform_indices = @transform_0, window_bounds = array<i64: 2, 64, 256>}, {pipeline_mode = #tpu.pipeline_mode<synchronous>, transform_indices = @transform_1, window_bounds = array<i64: 64, 4>}, {pipeline_mode = #tpu.pipeline_mode<synchronous>, transform_indices = @transform_2, window_bounds = array<i64: 4, 64>}, {transform_indices = @transform_3, window_bounds = array<i64: 2, 64, 256>}]} {
    %cst = arith.constant 0.000000e+00 : f32
    %0 = vector.broadcast %cst : f32 to vector<2x64xf32>
    %c0 = arith.constant 0 : index
    %c0_0 = arith.constant 0 : index
    %c0_1 = arith.constant 0 : index
    %1 = vector.load %arg1[%c0, %c0_0, %c0_1] : memref<2x64x256xf32, #tpu.memory_space<vmem>>, vector<2x64x256xf32>
    %cst_2 = arith.constant dense<0.000000e+00> : vector<2x64xf32>
    %2 = vector.multi_reduction <add>, %1, %cst_2 [2] : vector<2x64x256xf32> to vector<2x64xf32>
    %3 = arith.addf %0, %2 : vector<2x64xf32>
    %cst_3 = arith.constant 3.906250e-03 : f32
    %4 = vector.broadcast %cst_3 : f32 to vector<2x64xf32>
    %5 = arith.mulf %3, %4 : vector<2x64xf32>
    %c0_4 = arith.constant 0 : index
    %c0_5 = arith.constant 0 : index
    %6 = vector.load %arg2[%c0_4, %c0_5] : memref<64x4xf32, #tpu.memory_space<vmem>>, vector<64x4xf32>
    %cst_6 = arith.constant dense<0.000000e+00> : vector<2x4xf32>
    %7 = tpu.matmul %5, %6, %cst_6 {dimension_numbers = #tpu.dot_dimension_numbers<[1], [0], [0], [1], [0, 0, 1, 1], [], []>} : vector<2x64xf32>, vector<64x4xf32>, vector<2x4xf32> -> vector<2x4xf32>
    %cst_7 = arith.constant 0.000000e+00 : f32
    %8 = vector.broadcast %cst_7 : f32 to vector<2x4xf32>
    %9 = arith.maximumf %7, %8 : vector<2x4xf32>
    %c0_8 = arith.constant 0 : index
    %c0_9 = arith.constant 0 : index
    %10 = vector.load %arg3[%c0_8, %c0_9] : memref<4x64xf32, #tpu.memory_space<vmem>>, vector<4x64xf32>
    %cst_10 = arith.constant dense<0.000000e+00> : vector<2x64xf32>
    %11 = tpu.matmul %9, %10, %cst_10 {dimension_numbers = #tpu.dot_dimension_numbers<[1], [0], [0], [1], [0, 0, 1, 1], [], []>} : vector<2x4xf32>, vector<4x64xf32>, vector<2x64xf32> -> vector<2x64xf32>
    %12 = arith.negf %11 : vector<2x64xf32>
    %13 = math.exp %12 : vector<2x64xf32>
    %cst_11 = arith.constant 1.000000e+00 : f32
    %14 = vector.broadcast %cst_11 : f32 to vector<2x64xf32>
    %15 = arith.addf %14, %13 : vector<2x64xf32>
    %16 = arith.divf %14, %15 : vector<2x64xf32>
    %c0_12 = arith.constant 0 : index
    %c0_13 = arith.constant 0 : index
    %c0_14 = arith.constant 0 : index
    %17 = vector.load %arg1[%c0_12, %c0_13, %c0_14] : memref<2x64x256xf32, #tpu.memory_space<vmem>>, vector<2x64x256xf32>
    %18 = vector.shape_cast %16 : vector<2x64xf32> to vector<2x64x1xf32>
    %19 = vector.broadcast %18 : vector<2x64x1xf32> to vector<2x64x256xf32>
    %20 = arith.mulf %17, %19 : vector<2x64x256xf32>
    %c0_15 = arith.constant 0 : index
    %c0_16 = arith.constant 0 : index
    %c0_17 = arith.constant 0 : index
    %21 = vector.load %arg4[%c0_15, %c0_16, %c0_17] : memref<2x64x256xf32, #tpu.memory_space<vmem>>, vector<2x64x256xf32>
    tpu.vector_store %arg4[%c0_15, %c0_16, %c0_17], %20 {strides = array<i32>} : memref<2x64x256xf32, #tpu.memory_space<vmem>>, vector<2x64x256xf32>,
    return
  }
  func.func @transform_0(%arg0: i32) -> (i32, i32, i32) {
    %c0_i32 = arith.constant 0 : i32
    %c0_i32_0 = arith.constant 0 : i32
    %c0_i32_1 = arith.constant 0 : i32
    return %arg0, %c0_i32, %c0_i32_0 : i32, i32, i32
  }
  func.func @transform_1(%arg0: i32) -> (i32, i32) {
    %c0_i32 = arith.constant 0 : i32
    %c0_i32_0 = arith.constant 0 : i32
    %c0_i32_1 = arith.constant 0 : i32
    return %c0_i32, %c0_i32_0 : i32, i32
  }
  func.func @transform_2(%arg0: i32) -> (i32, i32) {
    %c0_i32 = arith.constant 0 : i32
    %c0_i32_0 = arith.constant 0 : i32
    %c0_i32_1 = arith.constant 0 : i32
    return %c0_i32, %c0_i32_0 : i32, i32
  }
  func.func @transform_3(%arg0: i32) -> (i32, i32, i32) {
    %c0_i32 = arith.constant 0 : i32
    %c0_i32_0 = arith.constant 0 : i32
    %c0_i32_1 = arith.constant 0 : i32
    return %arg0, %c0_i32, %c0_i32_0 : i32, i32, i32
  }
}

</mosaic_0001>

<bundles_post_ra>
// kernel: tpu_custom_call.1
= control target key start
LH: loop header
LB: loop body
LE: loop exit
PB: predicated region body
PF: predicated region fallthrough
CT: control target
= control target key end

     0   :  { %8 = vsyncpa [#allocation3], 0  ;;  %s881_s0 = inlined_call_operand.hbm [shape: f32[2,64,256], index: 0, kind: input, shape index: {}]   ;;  %s882_s1 = inlined_call_operand.vmem [shape: f32[64,4], index: 1, kind: input, shape index: {}]   ;;  %s883_s2 = inlined_call_operand.vmem [shape: f32[4,64], index: 2, kind: input, shape index: {}]   ;;  %s884_s3 = inlined_call_operand.hbm [shape: f32[2,64,256], index: 3, kind: output, shape index: {}]  }
   0x1   :  { %9 = vsyncpa [#allocation4], 0  ;;  %s664_s12 = smov [#allocation2]  }
   0x2   :  { %s15_s13 = sshll.u32 %s664_s12, 4  ;;  %s16_s13 = int_to_ptr.vmem [resolvable:$true] %s15_s13 }
   0x3   :  { %s628_s14 = scalar_lea.vmem %s16_s13, 4096  ;;  %p633_p1 = scmp.lt.s32.totalorder %s16_s13, %s16_s13 }
   0x4   :  { %p629_p0 = scmp.ne.s32.totalorder %s16_s13, %s628_s14  ;;  %p634_p2 = scmp.lt.s32.totalorder %s628_s14, %s628_s14 }
   0x6   :  { %p635_p3 = por %p634_p2, %p633_p1 }
   0x8   :  { %p636_p4 = pnand %p635_p3, %p629_p0 }
   0xa   :  { %639 = shalt.err (!%p636_p4)
}
   0xb   :  { %s665_s15 = smov 256   ;;  %s666_s16 = smov 16  }
   0xc   :  { %21 = dma.hbm_to_vmem [thread:$0]  %s881_s0, 4096, %s16_s13, [#allocation3], %s665_s15, %s665_s15, %s666_s16  }
   0xd   :  { %660 = dma.done.wait [#allocation3], 4096  }
   0xe   :  { %661 = vsyncadd [#allocation3], 4294963200  ;;  %v696_v0 = vld [vmem:[#allocation2 + $0x80] sm:$0xff]  ;;  %v698_v1 = vld [vmem:[#allocation2 + $0x88] sm:$0xff]  ;;  %v667_v48 = vmov 0.0   ;;  %vm668_vm0 = vmmov 0   ;;  %v165_v61 = vlaneseq }
   0xf   :  { %v700_v2 = vld [vmem:[#allocation2] sm:$0xff]  ;;  %v85_v3 = vadd.f32 %v698_v1, %v696_v0  ;;  %v704_v4 = vld [vmem:[#allocation2 + $0x8] sm:$0xff]  ;;  %v706_v5 = vld [vmem:[#allocation2 + $0x90] sm:$0xff]  ;;  %586 = vmatprep.subr.mxu0 %v667_v48  ;;  %605 = vmatprep.subr.mxu1 %v667_v48  ;;  %vm176_vm1 = vcmask 130112   ;;  %vm183_vm2 = vcmask 195712   ;;  %vm190_vm3 = vcmask 261312  }
  0x10   :  { %v708_v6 = vld [vmem:[#allocation2 + $0x98] sm:$0xff]  ;;  %v61_v7 = vadd.f32 %v704_v4, %v700_v2  ;;  %v712_v8 = vld [vmem:[#allocation2 + $0x10] sm:$0xff]  ;;  %v720_v12 = vld [vmem:[#allocation2 + $0xa0] sm:$0xff]  ;;  %602 = vmatprep.mubr.msk.f32.mxu0 %vm668_vm0, %v667_v48  ;;  %607 = vmatprep.mubr.msk.f32.mxu1 %vm668_vm0, %v667_v48  ;;  %vm197_vm4 = vcmask 326912   ;;  %vm204_vm5 = vcmask 392512   ;;  %vm211_vm6 = vcmask 458112  }
  0x11   :  { %v714_v9 = vld [vmem:[#allocation2 + $0x18] sm:$0xff]  ;;  %86 = vadd.xlane.f32.xlu1 %v85_v3  ;;  %v88_v10 = vadd.f32 %v708_v6, %v706_v5  ;;  %v722_v13 = vld [vmem:[#allocation2 + $0xa8] sm:$0xff]  ;;  %v724_v14 = vld [vmem:[#allocation2 + $0x20] sm:$0xff]  ;;  %v166_v3 = vand.u32 127, %v165_v61  ;;  %vm218_vm7 = vcmask 523712   ;;  %vm259_vm8 = vcmask 1041409  }
  0x12   :  { %62 = vadd.xlane.f32.xlu0 %v61_v7  ;;  %v64_v11 = vadd.f32 %v714_v9, %v712_v8  ;;  %v726_v15 = vld [vmem:[#allocation2 + $0x28] sm:$0xff]  ;;  %v91_v16 = vadd.f32 %v722_v13, %v720_v12  ;;  %v732_v18 = vld [vmem:[#allocation2 + $0xb0] sm:$0xff]  ;;  %v734_v19 = vld [vmem:[#allocation2 + $0xb8] sm:$0xff]  ;;  %vm261_vm9 = vcmask 523264   ;;  %vm340_vm10 = vcmask 1043456  }
  0x13   :  { %v67_v17 = vadd.f32 %v726_v15, %v724_v14  ;;  %892 = vst [vmem:[#allocation8_spill] sm:$0xff] %v734_v19  ;;  %v736_v20 = vld [vmem:[#allocation2 + $0x30] sm:$0xff]  ;;  %v738_v21 = vld [vmem:[#allocation2 + $0x38] sm:$0xff]  ;;  %v94_v22 = vadd.f32 %v734_v19, %v732_v18  ;;  %v744_v24 = vld [vmem:[#allocation2 + $0xc0] sm:$0xff]  ;;  %vm336_vm11 = vcmask 31744  }
  0x14   :  { %v70_v23 = vadd.f32 %v738_v21, %v736_v20  ;;  %v746_v25 = vld [vmem:[#allocation2 + $0xc8] sm:$0xff]  ;;  %v748_v26 = vld [vmem:[#allocation2 + $0x40] sm:$0xff]  ;;  %v756_v30 = vld [vmem:[#allocation2 + $0xd0] sm:$0xff] }
  0x15   :  { %89 = vadd.xlane.f32.xlu1 %v88_v10  ;;  %v750_v27 = vld [vmem:[#allocation2 + $0x48] sm:$0xff]  ;;  %v97_v28 = vadd.f32 %v746_v25, %v744_v24  ;;  %893 = vst [vmem:[#allocation9_spill] sm:$0xff] %v756_v30  ;;  %v758_v31 = vld [vmem:[#allocation2 + $0xd8] sm:$0xff]  ;;  %v760_v32 = vld [vmem:[#allocation2 + $0x50] sm:$0xff]  ;;  %v816_v10 = vshrl.u32 %v165_v61, 7 }
  0x16   :  { %65 = vadd.xlane.f32.xlu0 %v64_v11  ;;  %v73_v29 = vadd.f32 %v750_v27, %v748_v26  ;;  %894 = vst [vmem:[#allocation10_spill] sm:$0xff] %v758_v31  ;;  %v762_v33 = vld [vmem:[#allocation2 + $0x58] sm:$0xff]  ;;  %v100_v34 = vadd.f32 %v758_v31, %v756_v30  ;;  %v768_v36 = vld [vmem:[#allocation2 + $0xe0] sm:$0xff]  ;;  %v770_v37 = vld [vmem:[#allocation2 + $0xe8] sm:$0xff] }
  0x17   :  { %v76_v35 = vadd.f32 %v762_v33, %v760_v32  ;;  %895 = vst [vmem:[#allocation11_spill] sm:$0xff] %v768_v36  ;;  %896 = vst [vmem:[#allocation12_spill] sm:$0xff] %v770_v37  ;;  %v772_v38 = vld [vmem:[#allocation2 + $0x60] sm:$0xff]  ;;  %v774_v39 = vld [vmem:[#allocation2 + $0x68] sm:$0xff]  ;;  %v103_v40 = vadd.f32 %v770_v37, %v768_v36 }
  0x18   :  { %v79_v41 = vadd.f32 %v774_v39, %v772_v38  ;;  %v780_v42 = vld [vmem:[#allocation2 + $0xf0] sm:$0xff]  ;;  %v782_v43 = vld [vmem:[#allocation2 + $0xf8] sm:$0xff]  ;;  %v146_v51 = vld [vmem:[%s882_s1 + $0x28] sm:$0xff] }
  0x19   :  { %92 = vadd.xlane.f32.xlu1 %v91_v16  ;;  %897 = vst [vmem:[#allocation13_spill] sm:$0xff] %v780_v42  ;;  %898 = vst [vmem:[#allocation14_spill] sm:$0xff] %v782_v43  ;;  %v784_v44 = vld [vmem:[#allocation2 + $0x70] sm:$0xff]  ;;  %v786_v45 = vld [vmem:[#allocation2 + $0x78] sm:$0xff]  ;;  %v106_v46 = vadd.f32 %v782_v43, %v780_v42  ;;  %v171_v16 = vadd.s32 4294967288, %v166_v3 }
  0x1a   :  { %68 = vadd.xlane.f32.xlu0 %v67_v17  ;;  %v82_v47 = vadd.f32 %v786_v45, %v784_v44  ;;  %v148_v49 = vld [vmem:[%s882_s1 + $0x38] sm:$0xff]  ;;  %v147_v50 = vld [vmem:[%s882_s1 + $0x30] sm:$0xff]  ;;  %v145_v52 = vld [vmem:[%s882_s1 + $0x20] sm:$0xff]  ;;  %v178_v17 = vadd.s32 4294967280, %v166_v3 }
  0x1b   :  { %587 = vmatpush3.msra.mxu0 %v148_v49  ;;  %v144_v53 = vld [vmem:[%s882_s1 + $0x18] sm:$0xff]  ;;  %v143_v54 = vld [vmem:[%s882_s1 + $0x10] sm:$0xff]  ;;  %v142_v55 = vld [vmem:[%s882_s1 + $0x8] sm:$0xff] }
  0x1c   :  { %588 = vmatprep.subr.mxu0 %v667_v48  ;;  %v141_v56 = vld [vmem:[%s882_s1] sm:$0xff] }
  0x1d   :  { %95 = vadd.xlane.f32.xlu1 %v94_v22  ;;  %589 = vmatpush3.msra.mxu0 %v147_v50  ;;  %v185_v22 = vadd.s32 4294967272, %v166_v3 }
  0x1e   :  { %71 = vadd.xlane.f32.xlu0 %v70_v23  ;;  %590 = vmatprep.subr.mxu0 %v667_v48  ;;  %v192_v23 = vadd.s32 4294967264, %v166_v3 }
  0x1f   :  { %591 = vmatpush3.msra.mxu0 %v146_v51 }
  0x20   :  { %592 = vmatprep.subr.mxu0 %v667_v48  ;;  %v195_v49 = vsub.s32 %v192_v23, %v816_v10  ;;  %v213_v23 = vadd.s32 4294967240, %v166_v3 }
  0x21   :  { %98 = vadd.xlane.f32.xlu1 %v97_v28  ;;  %593 = vmatpush3.msra.mxu0 %v145_v52 }
  0x22   :  { %74 = vadd.xlane.f32.xlu0 %v73_v29  ;;  %594 = vmatprep.subr.mxu0 %v667_v48  ;;  %v199_v29 = vadd.s32 4294967256, %v166_v3 }
  0x23   :  { %595 = vmatpush3.msra.mxu0 %v144_v53 }
  0x24   :  { %596 = vmatprep.subr.mxu0 %v667_v48  ;;  %v202_v52 = vsub.s32 %v199_v29, %v816_v10 }
  0x25   :  { %101 = vadd.xlane.f32.xlu1 %v100_v34  ;;  %597 = vmatpush3.msra.mxu0 %v143_v54  ;;  %v169_v34 = vsub.s32 %v166_v3, %v816_v10 }
  0x26   :  { %77 = vadd.xlane.f32.xlu0 %v76_v35  ;;  %598 = vmatprep.subr.mxu0 %v667_v48 }
  0x27   :  { %599 = vmatpush3.msra.mxu0 %v142_v55 }
  0x28   :  { %600 = vmatprep.subr.mxu0 %v667_v48  ;;  %v188_v48 = vsub.s32 %v185_v22, %v816_v10 }
  0x29   :  { %104 = vadd.xlane.f32.xlu1 %v103_v40  ;;  %601 = vmatpush3.msra.mxu0 %v141_v56  ;;  %v174_v40 = vsub.s32 %v171_v16, %v816_v10 }
  0x2a   :  { %80 = vadd.xlane.f32.xlu0 %v79_v41  ;;  %v181_v41 = vsub.s32 %v178_v17, %v816_v10 }
  0x2d   :  { %107 = vadd.xlane.f32.xlu1 %v106_v46  ;;  %v206_v46 = vadd.s32 4294967248, %v166_v3  ;;  %v216_v3 = vsub.s32 %v213_v23, %v816_v10 }
  0x2e   :  { %83 = vadd.xlane.f32.xlu0 %v82_v47 }
  0x9a   :  { %v87_v57 = vpop.xlane.xlu1 %86 }
  0x9b   :  { %v63_v58 = vpop.xlane.xlu0 %62  ;;  %v133_v54 = vmul.f32 0.00390625, %v87_v57 }
  0x9c   :  { %v125_v16 = vmul.f32 0.00390625, %v63_v58 }
  0x9d   :  { %v223_v37 = vrot.slane %v133_v54, %v169_v34 }
  0x9e   :  { %v90_v59 = vpop.xlane.xlu1 %89  ;;  %v170_v19 = vrot.slane %v125_v16, %v169_v34 }
  0x9f   :  { %v66_v60 = vpop.xlane.xlu0 %65  ;;  %v134_v47 = vmul.f32 0.00390625, %v90_v59  ;;  %v209_v59 = vsub.s32 %v206_v46, %v816_v10 }
  0xa0   :  { %v126_v50 = vmul.f32 0.00390625, %v66_v60 }
  0xa1   :  { %v227_v22 = vrot.slane %v134_v47, %v174_v40 }
  0xa2   :  { %v93_v62 = vpop.xlane.xlu1 %92  ;;  %v175_v60 = vrot.slane %v126_v50, %v174_v40 }
  0xa3   :  { %v69_v63 = vpop.xlane.xlu0 %68  ;;  %v135_v51 = vmul.f32 0.00390625, %v93_v62  ;;  %v228_v46 = vsel %vm176_vm1, %v227_v22, %v223_v37  ;;  %v335_v22 = vld [vmem:[%s883_s2] sm:$0xf]  ;;  %s669_s2 = smov [#allocation5]  }
  0xa4   :  { %v127_v55 = vmul.f32 0.00390625, %v69_v63  ;;  %v177_v40 = vsel %vm176_vm1, %v175_v60, %v170_v19  ;;  %606 = vmatpush3.msk.msra.mxu1 %vm340_vm10, %v335_v22  ;;  %s559_s8 = sshll.u32 %s669_s2, 4  ;;  %s560_s8 = int_to_ptr.vmem [resolvable:$true] %s559_s8 }
  0xa5   :  { %v232_v62 = vrot.slane %v135_v51, %v181_v41  ;;  %s640_s9 = scalar_lea.vmem %s560_s8, 4096  ;;  %p645_p6 = scmp.lt.s32.totalorder %s560_s8, %s560_s8 }
  0xa6   :  { %v96_v7 = vpop.xlane.xlu1 %95  ;;  %v182_v57 = vrot.slane %v127_v55, %v181_v41  ;;  %p641_p5 = scmp.ne.s32.totalorder %s560_s8, %s640_s9  ;;  %p646_p7 = scmp.lt.s32.totalorder %s640_s9, %s640_s9 }
  0xa7   :  { %v72_v11 = vpop.xlane.xlu0 %71  ;;  %v136_v56 = vmul.f32 0.00390625, %v96_v7  ;;  %v233_v50 = vsel %vm183_vm2, %v232_v62, %v228_v46 }
  0xa8   :  { %v128_v17 = vmul.f32 0.00390625, %v72_v11  ;;  %v184_v54 = vsel %vm183_vm2, %v182_v57, %v177_v40  ;;  %p647_p8 = por %p646_p7, %p645_p6 }
  0xa9   :  { %v237_v63 = vrot.slane %v136_v56, %v188_v48 }
  0xaa   :  { %v99_v28 = vpop.xlane.xlu1 %98  ;;  %v189_v58 = vrot.slane %v128_v17, %v188_v48  ;;  %p648_p9 = pnand %p647_p8, %p641_p5 }
  0xab   :  { %v75_v35 = vpop.xlane.xlu0 %74  ;;  %v137_v43 = vmul.f32 0.00390625, %v99_v28  ;;  %v238_v34 = vsel %vm190_vm3, %v237_v63, %v233_v50 }
  0xac   :  { %v129_v42 = vmul.f32 0.00390625, %v75_v35  ;;  %v191_v37 = vsel %vm190_vm3, %v189_v58, %v184_v54 }
  0xad   :  { %v242_v11 = vrot.slane %v137_v43, %v195_v49 }
  0xae   :  { %v102_v53 = vpop.xlane.xlu1 %101  ;;  %v196_v47 = vrot.slane %v129_v42, %v195_v49 }
  0xaf   :  { %v78_v61 = vpop.xlane.xlu0 %77  ;;  %v138_v31 = vmul.f32 0.00390625, %v102_v53 }
  0xb0   :  { %v130_v30 = vmul.f32 0.00390625, %v78_v61  ;;  %v198_v19 = vsel %vm197_vm4, %v196_v47, %v191_v37  ;;  %v457_v47 = vsub.s32 1, %v816_v10 }
  0xb1   :  { %v247_v35 = vrot.slane %v138_v31, %v202_v52  ;;  %v243_v31 = vsel %vm197_vm4, %v242_v11, %v238_v34  ;;  %v422_v11 = vsub.s32 0, %v816_v10 }
  0xb2   :  { %v105_v29 = vpop.xlane.xlu1 %104  ;;  %v203_v51 = vrot.slane %v130_v30, %v202_v52 }
  0xb3   :  { %v139_v7 = vmul.f32 0.00390625, %v105_v29  ;;  %v81_v36 = vpop.xlane.xlu0 %80  ;;  %v248_v49 = vsel %vm204_vm5, %v247_v35, %v243_v31 }
  0xb4   :  { %v131_v28 = vmul.f32 0.00390625, %v81_v36  ;;  %v205_v52 = vsel %vm204_vm5, %v203_v51, %v198_v19 }
  0xb5   :  { %v252_v53 = vrot.slane %v139_v7, %v209_v59 }
  0xb6   :  { %v108_v41 = vpop.xlane.xlu1 %107  ;;  %v210_v48 = vrot.slane %v131_v28, %v209_v59 }
  0xb7   :  { %v140_v43 = vmul.f32 0.00390625, %v108_v41  ;;  %v84_v36 = vpop.xlane.xlu0 %83  ;;  %v253_v55 = vsel %vm211_vm6, %v252_v53, %v248_v49 }
  0xb8   :  { %v132_v42 = vmul.f32 0.00390625, %v84_v36  ;;  %v212_v61 = vsel %vm211_vm6, %v210_v48, %v205_v52 }
  0xb9   :  { %v257_v30 = vrot.slane %v140_v43, %v216_v3 }
  0xba   :  { %v217_v56 = vrot.slane %v132_v42, %v216_v3 }
  0xbb   :  { %v258_v16 = vsel %vm218_vm7, %v257_v30, %v253_v55  ;;  %v899_v55 = vld [vmem:[#allocation8_spill] sm:$0xff] }
  0xbc   :  { %v219_v17 = vsel %vm218_vm7, %v217_v56, %v212_v61  ;;  %v900_v61 = vld [vmem:[#allocation11_spill] sm:$0xff] }
  0xbd   :  { %v260_v59 = vsel %vm259_vm8, %v258_v16, %v219_v17  ;;  %v901_v17 = vld [vmem:[#allocation12_spill] sm:$0xff] }
  0xbe   :  { %603 = vmatmul.mubr.msk.f32.vlgmr.msra.gmra.mxu0 %vm261_vm9, %v260_v59  ;;  %v903_v59 = vld [vmem:[#allocation10_spill] sm:$0xff] }
 0x17e   :  { %v330_v23 = vpop.f32.mrf.mxu0 }
 0x17f   :  { %v334_v60 = vmax.f32 %v330_v23, 0.0  ;;  %v904_v23 = vld [vmem:[#allocation13_spill] sm:$0xff] }
 0x180   :  { %v604_v62 = vpop.f32.mrf.mxu0 }
 0x181   :  { %608 = vmatmul.mubr.msk.f32.vlgmr.msra.gmra.mxu1 %vm336_vm11, %v334_v60  ;;  %v905_v62 = vld [vmem:[#allocation14_spill] sm:$0xff] }
 0x241   :  { %v410_v29 = vpop.f32.mrf.mxu1 }
 0x242   :  { %v574_v57 = vmul.f32 -1.442695, %v410_v29 }
 0x243   :  { %v609_v63 = vpop.f32.mrf.mxu1 }
 0x244   :  { %616 = vpow2.f32 %v574_v57 }
 0x251   :  { %v617_v7 = vpop.eup %616 }
 0x252   :  { %v417_v58 = vadd.f32 1.0, %v617_v7 }
 0x254   :  { %618 = vrcp.f32 %v417_v58 }
 0x261   :  { %v619_v28 = vpop.eup %618 }
 0x262   :  { %v423_v46 = vrot.slane %v619_v28, %v422_v11  ;;  %v458_v35 = vrot.slane %v619_v28, %v457_v47 }
 0x264   :  { %429 = vbcast.lane.b32.xlu1 %v423_v46, 264  ;;  %425 = vbcast.lane.b32.xlu0 %v423_v46, 256 }
 0x268   :  { %433 = vbcast.lane.b32.xlu1 %v423_v46, 272  ;;  %441 = vbcast.lane.b32.xlu0 %v423_v46, 288 }
 0x26c   :  { %437 = vbcast.lane.b32.xlu1 %v423_v46, 280  ;;  %449 = vbcast.lane.b32.xlu0 %v423_v46, 304 }
 0x270   :  { %445 = vbcast.lane.b32.xlu1 %v423_v46, 296  ;;  %460 = vbcast.lane.b32.xlu0 %v458_v35, 256 }
 0x274   :  { %453 = vbcast.lane.b32.xlu1 %v423_v46, 312  ;;  %468 = vbcast.lane.b32.xlu0 %v458_v35, 272 }
 0x278   :  { %464 = vbcast.lane.b32.xlu1 %v458_v35, 264  ;;  %476 = vbcast.lane.b32.xlu0 %v458_v35, 288 }
 0x27c   :  { %472 = vbcast.lane.b32.xlu1 %v458_v35, 280  ;;  %484 = vbcast.lane.b32.xlu0 %v458_v35, 304 }
 0x280   :  { %480 = vbcast.lane.b32.xlu1 %v458_v35, 296 }
 0x284   :  { %488 = vbcast.lane.b32.xlu1 %v458_v35, 312 }
 0x2d6   :  { %v430_v3 = vpop.permute.xlu1 %429  ;;  %v426_v40 = vpop.permute.xlu0 %425 }
 0x2d7   :  { %v492_v50 = vmul.f32 %v430_v3, %v712_v8  ;;  %v493_v51 = vmul.f32 %v430_v3, %v714_v9  ;;  %v490_v10 = vmul.f32 %v426_v40, %v700_v2  ;;  %v491_v53 = vmul.f32 %v426_v40, %v704_v4 }
 0x2d9   :  { %524 = vst [vmem:[#allocation5 + $0x10] sm:$0xff] %v492_v50  ;;  %525 = vst [vmem:[#allocation5 + $0x18] sm:$0xff] %v493_v51 }
 0x2da   :  { %522 = vst [vmem:[#allocation5] sm:$0xff] %v490_v10  ;;  %523 = vst [vmem:[#allocation5 + $0x8] sm:$0xff] %v491_v53  ;;  %v434_v41 = vpop.permute.xlu1 %433  ;;  %v442_v54 = vpop.permute.xlu0 %441 }
 0x2db   :  { %v494_v34 = vmul.f32 %v434_v41, %v724_v14  ;;  %v495_v48 = vmul.f32 %v434_v41, %v726_v15  ;;  %v498_v43 = vmul.f32 %v442_v54, %v748_v26  ;;  %v499_v8 = vmul.f32 %v442_v54, %v750_v27 }
 0x2dd   :  { %526 = vst [vmem:[#allocation5 + $0x20] sm:$0xff] %v494_v34  ;;  %527 = vst [vmem:[#allocation5 + $0x28] sm:$0xff] %v495_v48 }
 0x2de   :  { %530 = vst [vmem:[#allocation5 + $0x40] sm:$0xff] %v498_v43  ;;  %531 = vst [vmem:[#allocation5 + $0x48] sm:$0xff] %v499_v8  ;;  %v438_v2 = vpop.permute.xlu1 %437  ;;  %v450_v4 = vpop.permute.xlu0 %449 }
 0x2df   :  { %v496_v9 = vmul.f32 %v438_v2, %v736_v20  ;;  %v497_v36 = vmul.f32 %v438_v2, %v738_v21  ;;  %v502_v37 = vmul.f32 %v450_v4, %v772_v38  ;;  %v503_v14 = vmul.f32 %v450_v4, %v774_v39 }
 0x2e1   :  { %528 = vst [vmem:[#allocation5 + $0x30] sm:$0xff] %v496_v9  ;;  %529 = vst [vmem:[#allocation5 + $0x38] sm:$0xff] %v497_v36 }
 0x2e2   :  { %534 = vst [vmem:[#allocation5 + $0x60] sm:$0xff] %v502_v37  ;;  %535 = vst [vmem:[#allocation5 + $0x68] sm:$0xff] %v503_v14  ;;  %v446_v15 = vpop.permute.xlu1 %445  ;;  %v461_v26 = vpop.permute.xlu0 %460 }
 0x2e3   :  { %v500_v27 = vmul.f32 %v446_v15, %v760_v32  ;;  %v501_v31 = vmul.f32 %v446_v15, %v762_v33  ;;  %v506_v42 = vmul.f32 %v461_v26, %v696_v0  ;;  %v507_v20 = vmul.f32 %v461_v26, %v698_v1 }
 0x2e5   :  { %532 = vst [vmem:[#allocation5 + $0x50] sm:$0xff] %v500_v27  ;;  %533 = vst [vmem:[#allocation5 + $0x58] sm:$0xff] %v501_v31 }
 0x2e6   :  { %538 = vst [vmem:[#allocation5 + $0x80] sm:$0xff] %v506_v42  ;;  %539 = vst [vmem:[#allocation5 + $0x88] sm:$0xff] %v507_v20  ;;  %v454_v21 = vpop.permute.xlu1 %453  ;;  %v469_v38 = vpop.permute.xlu0 %468 }
 0x2e7   :  { %v504_v39 = vmul.f32 %v454_v21, %v784_v44  ;;  %v505_v19 = vmul.f32 %v454_v21, %v786_v45  ;;  %v510_v49 = vmul.f32 %v469_v38, %v720_v12  ;;  %v511_v32 = vmul.f32 %v469_v38, %v722_v13 }
 0x2e9   :  { %536 = vst [vmem:[#allocation5 + $0x70] sm:$0xff] %v504_v39  ;;  %537 = vst [vmem:[#allocation5 + $0x78] sm:$0xff] %v505_v19 }
 0x2ea   :  { %542 = vst [vmem:[#allocation5 + $0xa0] sm:$0xff] %v510_v49  ;;  %543 = vst [vmem:[#allocation5 + $0xa8] sm:$0xff] %v511_v32  ;;  %v465_v0 = vpop.permute.xlu1 %464  ;;  %v477_v1 = vpop.permute.xlu0 %476 }
 0x2eb   :  { %v508_v33 = vmul.f32 %v465_v0, %v706_v5  ;;  %v509_v30 = vmul.f32 %v465_v0, %v708_v6  ;;  %v514_v52 = vmul.f32 %v477_v1, %v744_v24  ;;  %v515_v44 = vmul.f32 %v477_v1, %v746_v25  ;;  %v902_v24 = vld [vmem:[#allocation9_spill] sm:$0xff] }
 0x2ed   :  { %540 = vst [vmem:[#allocation5 + $0x90] sm:$0xff] %v508_v33  ;;  %541 = vst [vmem:[#allocation5 + $0x98] sm:$0xff] %v509_v30 }
 0x2ee   :  { %546 = vst [vmem:[#allocation5 + $0xc0] sm:$0xff] %v514_v52  ;;  %547 = vst [vmem:[#allocation5 + $0xc8] sm:$0xff] %v515_v44  ;;  %v473_v12 = vpop.permute.xlu1 %472  ;;  %v485_v13 = vpop.permute.xlu0 %484 }
 0x2ef   :  { %v512_v45 = vmul.f32 %v473_v12, %v732_v18  ;;  %v513_v56 = vmul.f32 %v473_v12, %v899_v55  ;;  %v518_v16 = vmul.f32 %v485_v13, %v900_v61  ;;  %v519_v5 = vmul.f32 %v485_v13, %v901_v17 }
 0x2f1   :  { %544 = vst [vmem:[#allocation5 + $0xb0] sm:$0xff] %v512_v45  ;;  %545 = vst [vmem:[#allocation5 + $0xb8] sm:$0xff] %v513_v56 }
 0x2f2   :  { %550 = vst [vmem:[#allocation5 + $0xe0] sm:$0xff] %v518_v16  ;;  %551 = vst [vmem:[#allocation5 + $0xe8] sm:$0xff] %v519_v5  ;;  %v481_v6 = vpop.permute.xlu1 %480 }
 0x2f3   :  { %v516_v25 = vmul.f32 %v481_v6, %v902_v24  ;;  %v517_v22 = vmul.f32 %v481_v6, %v903_v59 }
 0x2f5   :  { %548 = vst [vmem:[#allocation5 + $0xd0] sm:$0xff] %v516_v25  ;;  %549 = vst [vmem:[#allocation5 + $0xd8] sm:$0xff] %v517_v22 }
 0x2f6   :  { %v489_v18 = vpop.permute.xlu1 %488 }
 0x2f7   :  { %v520_v60 = vmul.f32 %v489_v18, %v904_v23  ;;  %v521_v29 = vmul.f32 %v489_v18, %v905_v62 }
 0x2f9   :  { %552 = vst [vmem:[#allocation5 + $0xf0] sm:$0xff] %v520_v60  ;;  %553 = vst [vmem:[#allocation5 + $0xf8] sm:$0xff] %v521_v29 }
 0x2fa   :  { %651 = shalt.err (!%p648_p9)
}
 0x2fb   :  { %565 = dma.vmem_to_hbm [thread:$0]  %s560_s8, 4096, %s884_s3, [#allocation4], %s665_s15, %s665_s15, %s666_s16  }
 0x2fc   :  { %662 = dma.done.wait [#allocation4], 4096  }
 0x2fd   :  { %663 = vsyncadd [#allocation4], 4294963200 }
 0x2fe   :  { %569 = vsyncpa [#allocation3], 1 }
 0x2ff   :  { %570 = vsyncpa [#allocation4], 1 }

</bundles_post_ra>
